<compile_context>
chip_gen: v7x
topology: tpu7x:2x2x1
jax: 0.10.0
libtpu: 0.0.40
codegen_flags: <defaults>
</compile_context>

<pallas_src>
import functools

import jax
import jax.numpy as jnp
from jax import lax
from jax.experimental import pallas as pl
from jax.experimental.pallas import tpu as pltpu

NUM_EMBED = 384   # number_of_embedding_dimensions (fixed by the module's Linear layers)


# ---------------------------------------------------------------------------
# Fused kernel: per batch element b:
#   qkv = x_b @ [Wq*scale | Wk | Wv]        (T, 3H)
#   s   = q @ k^T  (causal-masked)          (T, T)
#   out = softmax(s) @ v                    (T, H)
# ---------------------------------------------------------------------------
def head_kernel(x_ref, w_ref, o_ref, *, head_size):
    H = head_size
    x = x_ref[0]            # (T, C)  bf16
    w = w_ref[...]          # (C, 3H) bf16

    # Fused QKV projection on the MXU (N = 3H lanes), f32 accumulate.
    qkv = jnp.dot(x, w, preferred_element_type=jnp.float32)   # (T, 3H) f32
    q = qkv[:, :H].astype(jnp.bfloat16)          # scale already folded into Wq
    k = qkv[:, H:2 * H].astype(jnp.bfloat16)
    v = qkv[:, 2 * H:].astype(jnp.bfloat16)

    # scores = q @ k^T via dot_general (transpose folded into MXU operand feed)
    s = lax.dot_general(
        q, k, dimension_numbers=(((1,), (1,)), ((), ())),
        preferred_element_type=jnp.float32,
    )                                            # (T, T) f32

    T = s.shape[0]
    row = lax.broadcasted_iota(jnp.int32, (T, T), 0)
    col = lax.broadcasted_iota(jnp.int32, (T, T), 1)
    s = jnp.where(col <= row, s, -1e30)          # large finite negative: no NaN risk

    # Numerically stable softmax in f32; reciprocal on the EUP slot.
    m = jnp.max(s, axis=-1, keepdims=True)
    p = jnp.exp(s - m)
    denom = jnp.sum(p, axis=-1, keepdims=True)
    attn = p * pl.reciprocal(denom, approx=True)

    out = jnp.dot(attn.astype(jnp.bfloat16), v, preferred_element_type=jnp.float32)
    o_ref[0] = out.astype(o_ref.dtype)


# ---------------------------------------------------------------------------
# Wrapper: full Head.forward
# ---------------------------------------------------------------------------
def head_forward(x, wk, wq, wv):
    """x: (B, T, C) f32; wk/wq/wv: (C, H) f32 (pre-transposed Linear weights).

    Returns (B, T, H) in x.dtype.
    """
    B, T, C = x.shape
    H = wk.shape[1]

    # Reference scales by C**-0.5 (embedding dim, as in the PyTorch module);
    # fold it into the q columns of the fused weight (done once, outside the kernel).
    scale = C ** (-0.5)
    w_qkv = jnp.concatenate([wq * scale, wk, wv], axis=1).astype(jnp.bfloat16)
    x_bf = x.astype(jnp.bfloat16)

    kernel = functools.partial(head_kernel, head_size=H)
    return pl.pallas_call(
        kernel,
        out_shape=jax.ShapeDtypeStruct((B, T, H), x.dtype),
        grid_spec=pltpu.PrefetchScalarGridSpec(
            num_scalar_prefetch=0,
            grid=(B,),
            in_specs=[
                # this batch element's full sequence
                pl.BlockSpec((1, T, C), lambda b: (b, 0, 0)),
                # fused QKV weight: constant block index -> fetched once, stays resident
                pl.BlockSpec((C, 3 * H), lambda b: (0, 0)),
            ],
            out_specs=pl.BlockSpec((1, T, H), lambda b: (b, 0, 0)),
        ),
        compiler_params=pltpu.CompilerParams(dimension_semantics=("parallel",)),
    )(x_bf, w_qkv)


# ---------------------------------------------------------------------------
# Plain-JAX reference (matches the PyTorch forward in eval mode, all f32)
# ---------------------------------------------------------------------------
def reference_forward(x, wk, wq, wv):
    B, T, C = x.shape
    k = x @ wk
    q = x @ wq
    v = x @ wv
    w = (q @ jnp.swapaxes(k, -2, -1)) * (C ** -0.5)
    mask = jnp.tril(jnp.ones((T, T), dtype=bool))
    w = jnp.where(mask, w, -jnp.inf)
    w = jax.nn.softmax(w, axis=-1)
    return w @ v


if __name__ == "__main__":
    key = jax.random.PRNGKey(0)
    k_x, k_k, k_q, k_v = jax.random.split(key, 4)

    B, T, H = 2, 8, 64          # small batch/seq; C fixed by the module
    C = NUM_EMBED

    x = jax.random.normal(k_x, (B, T, C), dtype=jnp.float32)

    # nn.Linear(C, H, bias=False)-style init: U(-1/sqrt(C), 1/sqrt(C)),
    # stored pre-transposed as (C, H).
    bound = 1.0 / (C ** 0.5)
    wk = jax.random.uniform(k_k, (C, H), jnp.float32, -bound, bound)
    wq = jax.random.uniform(k_q, (C, H), jnp.float32, -bound, bound)
    wv = jax.random.uniform(k_v, (C, H), jnp.float32, -bound, bound)

    out = head_forward(x, wk, wq, wv)
    out = jax.block_until_ready(out)

    ref = reference_forward(x, wk, wq, wv)
    assert out.shape == (B, T, H)
    # bf16 matmuls with f32 accumulation -> loosened tolerance vs the f32 reference
    assert jnp.allclose(out, ref, atol=2e-2, rtol=2e-2), \
        float(jnp.max(jnp.abs(out - ref)))

    print("KERNEL_OK")
</pallas_src>

<mosaic_0001>
module attributes {stable_mosaic.version = 11 : i64} {
  func.func @head_kernel(%arg0: i32, %arg1: memref<1x8x384xbf16, #tpu.memory_space<vmem>>, %arg2: memref<384x192xbf16, #tpu.memory_space<vmem>>, %arg3: memref<1x8x64xf32, #tpu.memory_space<vmem>>) attributes {dimension_semantics = [#tpu.dimension_semantics<parallel>], iteration_bounds = array<i64: 2>, scalar_prefetch = 0 : i64, scratch_operands = 0 : i64, tpu.core_type = #tpu.core_type<tc>, window_params = [{transform_indices = @transform_0, window_bounds = array<i64: 1, 8, 384>}, {pipeline_mode = #tpu.pipeline_mode<synchronous>, transform_indices = @transform_1, window_bounds = array<i64: 384, 192>}, {transform_indices = @transform_2, window_bounds = array<i64: 1, 8, 64>}]} {
    %c0 = arith.constant 0 : index
    %c0_0 = arith.constant 0 : index
    %c0_1 = arith.constant 0 : index
    %0 = vector.load %arg1[%c0, %c0_0, %c0_1] : memref<1x8x384xbf16, #tpu.memory_space<vmem>>, vector<1x8x384xbf16>
    %1 = vector.shape_cast %0 : vector<1x8x384xbf16> to vector<8x384xbf16>
    %c0_2 = arith.constant 0 : index
    %c0_3 = arith.constant 0 : index
    %2 = vector.load %arg2[%c0_2, %c0_3] : memref<384x192xbf16, #tpu.memory_space<vmem>>, vector<384x192xbf16>
    %cst = arith.constant dense<0.000000e+00> : vector<8x192xf32>
    %3 = tpu.matmul %1, %2, %cst {dimension_numbers = #tpu.dot_dimension_numbers<[1], [0], [0], [1], [0, 0, 1, 1], [], []>} : vector<8x384xbf16>, vector<384x192xbf16>, vector<8x192xf32> -> vector<8x192xf32>
    %4 = vector.extract_strided_slice %3 {offsets = [0, 0], sizes = [8, 64], strides = [1, 1]} : vector<8x192xf32> to vector<8x64xf32>
    %5 = arith.truncf %4 : vector<8x64xf32> to vector<8x64xbf16>
    %6 = vector.extract_strided_slice %3 {offsets = [0, 64], sizes = [8, 64], strides = [1, 1]} : vector<8x192xf32> to vector<8x64xf32>
    %7 = arith.truncf %6 : vector<8x64xf32> to vector<8x64xbf16>
    %8 = vector.extract_strided_slice %3 {offsets = [0, 128], sizes = [8, 64], strides = [1, 1]} : vector<8x192xf32> to vector<8x64xf32>
    %9 = arith.truncf %8 : vector<8x64xf32> to vector<8x64xbf16>
    %cst_4 = arith.constant dense<0.000000e+00> : vector<8x8xf32>
    %10 = tpu.matmul %5, %7, %cst_4 {dimension_numbers = #tpu.dot_dimension_numbers<[1], [1], [0], [0], [0, 0, 1, 0], [], []>} : vector<8x64xbf16>, vector<8x64xbf16>, vector<8x8xf32> -> vector<8x8xf32>
    %11 = tpu.iota {dimensions = array<i32: 0>} : vector<8x8xi32>
    %12 = tpu.iota {dimensions = array<i32: 1>} : vector<8x8xi32>
    %13 = arith.cmpi sle, %12, %11 : vector<8x8xi32>
    %cst_5 = arith.constant -1.000000e+30 : f32
    %14 = vector.broadcast %cst_5 : f32 to vector<8x8xf32>
    %15 = arith.select %13, %10, %14 : vector<8x8xi1>, vector<8x8xf32>
    %cst_6 = arith.constant dense<0xFF800000> : vector<8xf32>
    %16 = vector.multi_reduction <maximumf>, %15, %cst_6 [1] : vector<8x8xf32> to vector<8xf32>
    %17 = vector.shape_cast %16 : vector<8xf32> to vector<8x1xf32>
    %18 = vector.broadcast %17 : vector<8x1xf32> to vector<8x8xf32>
    %19 = arith.subf %15, %18 : vector<8x8xf32>
    %20 = math.exp %19 : vector<8x8xf32>
    %cst_7 = arith.constant dense<0.000000e+00> : vector<8xf32>
    %21 = vector.multi_reduction <add>, %20, %cst_7 [1] : vector<8x8xf32> to vector<8xf32>
    %22 = vector.shape_cast %21 : vector<8xf32> to vector<8x1xf32>
    %23 = tpu.reciprocal %22 {approx = true} : vector<8x1xf32> -> vector<8x1xf32>
    %24 = vector.broadcast %23 : vector<8x1xf32> to vector<8x8xf32>
    %25 = arith.mulf %20, %24 : vector<8x8xf32>
    %26 = arith.truncf %25 : vector<8x8xf32> to vector<8x8xbf16>
    %cst_8 = arith.constant dense<0.000000e+00> : vector<8x64xf32>
    %27 = tpu.matmul %26, %9, %cst_8 {dimension_numbers = #tpu.dot_dimension_numbers<[1], [0], [0], [1], [0, 0, 1, 1], [], []>} : vector<8x8xbf16>, vector<8x64xbf16>, vector<8x64xf32> -> vector<8x64xf32>
    %c0_9 = arith.constant 0 : index
    %c0_10 = arith.constant 0 : index
    %c0_11 = arith.constant 0 : index
    %28 = vector.load %arg3[%c0_9, %c0_10, %c0_11] : memref<1x8x64xf32, #tpu.memory_space<vmem>>, vector<1x8x64xf32>
    %29 = vector.shape_cast %28 : vector<1x8x64xf32> to vector<8x64xf32>
    %30 = vector.shape_cast %27 : vector<8x64xf32> to vector<1x8x64xf32>
    tpu.vector_store %arg3[%c0_9, %c0_10, %c0_11], %30 {strides = array<i32>} : memref<1x8x64xf32, #tpu.memory_space<vmem>>, vector<1x8x64xf32>,
    return
  }
  func.func @transform_0(%arg0: i32) -> (i32, i32, i32) {
    %c0_i32 = arith.constant 0 : i32
    %c0_i32_0 = arith.constant 0 : i32
    %c0_i32_1 = arith.constant 0 : i32
    return %arg0, %c0_i32, %c0_i32_0 : i32, i32, i32
  }
  func.func @transform_1(%arg0: i32) -> (i32, i32) {
    %c0_i32 = arith.constant 0 : i32
    %c0_i32_0 = arith.constant 0 : i32
    %c0_i32_1 = arith.constant 0 : i32
    return %c0_i32, %c0_i32_0 : i32, i32
  }
  func.func @transform_2(%arg0: i32) -> (i32, i32, i32) {
    %c0_i32 = arith.constant 0 : i32
    %c0_i32_0 = arith.constant 0 : i32
    %c0_i32_1 = arith.constant 0 : i32
    return %arg0, %c0_i32, %c0_i32_0 : i32, i32, i32
  }
}

</mosaic_0001>

<bundles_post_ra>
// kernel: tpu_custom_call.1
= control target key start
LH: loop header
LB: loop body
LE: loop exit
PB: predicated region body
PF: predicated region fallthrough
CT: control target
= control target key end

     0   :  { %7 = vsyncpa [#allocation3], 0  ;;  %s1258_s0 = inlined_call_operand.vmem [shape: bf16[2,8,384], index: 0, kind: input, shape index: {}]   ;;  %s1259_s1 = inlined_call_operand.vmem [shape: bf16[384,192], index: 1, kind: input, shape index: {}]   ;;  %s1260_s2 = inlined_call_operand.hbm [shape: f32[2,8,64], index: 2, kind: output, shape index: {}]  }
   0x1   :  { %9 = vsyncpa [#allocation3 + $0x1], 0  ;;  %s1006_s9 = smov 0   ;;  %s1008_s10 = smov 0  }
   0x2   :  { %s1010_s11 = smov 0   ;;  %s1012_s12 = smov 0  }
   0x3 LB: > { %s1027_s13 = sadd.s32 4294967295, %s984_s12   ;;  %s718_s14 = sadd.s32 4294967294, %s984_s12   ;;  %s984_s12 = sphi %s1012_s12, %s1266_s12   ;;  %s980_s11 = sphi %s1010_s11, %s1265_s11   ;;  %s976_s10 = sphi %s1008_s10, %s1264_s10   ;;  %s972_s9 = sphi %s1006_s9, %s1263_s9  }
   0x4   : > { %s1031_s15 = sadd.s32 1, %s984_s12   ;;  %s69_s16 = sadd.s32 1, %s980_s11 }
   0x5   : > { %s66_s17 = ssub.s32 %s984_s12, %s1031_s15  ;;  %p79_p0 = scmp.ne.s32.totalorder %s980_s11, %s976_s10 }
   0x6   : > { %p67_p1 = scmp.eq.s32.totalorder %s66_s17, 0  ;;  %p80_p2 = scmp.eq.s32.totalorder %s1027_s13, 1 }
   0x7   : > { %p85_p3 = scmp.ne.s32.totalorder %s976_s10, %s972_s9  ;;  %p86_p4 = scmp.eq.s32.totalorder %s718_s14, 1 }
   0x8   : > { %s1042_s18 = scalar_select %p67_p1, %s980_s11, %s69_s16  }
   0x9   : > { %p1044_p5 = por %p80_p2, %p79_p0  ;;  %p1048_p6 = por %p86_p4, %p85_p3 }
   0xa   : > { %p721_p7 = scmp.ge.s32.totalorder %s984_s12, 1  ;;  %p115_p8 = scmp.lt.s32.totalorder %s984_s12, 3 }
   0xc   : > { %p116_p9 = pnand %p721_p7, %p115_p8 }
   0xd   : > { %v843_v0 = vld [vmem:[%s1259_s1 + $0x4] ss:$8 sps:$4 sm:$0xff] (!%p116_p9)   ;;  %v845_v1 = vld [vmem:[%s1259_s1] ss:$8 sps:$4 sm:$0xff] (!%p116_p9)   ;;  %v986_v2 = vmov (!%p116_p9), 0   ;;  %p137_p10 = scmp.lt.s32.totalorder (!%p116_p9), %s1027_s13, 1 }
   0xe   : > { %119 = sbr.rel (%p116_p9) target bundleno = 1173 (0x495), region = 28  ;;  %517 = vmatprep.mubr.bf16.mxu1 (!%p116_p9), %v986_v2  ;;  %444 = vmatprep.subr.bf16.mxu0 (!%p116_p9), %v843_v0  ;;  %v846_v3 = vld [vmem:[%s1259_s1 + $0x14] ss:$8 sps:$4 sm:$0xff] (!%p116_p9)   ;;  %v848_v4 = vld [vmem:[%s1259_s1 + $0x10] ss:$8 sps:$4 sm:$0xff] (!%p116_p9)   ;;  %v987_v57 = vmov (!%p116_p9), 0.0  }
   0xf   : > { %445 = vmatpush1.bf16.msra.mxu0 (!%p116_p9), %v845_v1  ;;  %v849_v5 = vld [vmem:[%s1259_s1 + $0x24] ss:$8 sps:$4 sm:$0xff] (!%p116_p9)   ;;  %v851_v6 = vld [vmem:[%s1259_s1 + $0x20] ss:$8 sps:$4 sm:$0xff] (!%p116_p9)   ;;  %v852_v7 = vld [vmem:[%s1259_s1 + $0x34] ss:$8 sps:$4 sm:$0xff] (!%p116_p9)  }
  0x10   : > { %446 = vmatprep.subr.bf16.mxu0 (!%p116_p9), %v846_v3  ;;  %v854_v8 = vld [vmem:[%s1259_s1 + $0x30] ss:$8 sps:$4 sm:$0xff] (!%p116_p9)   ;;  %v867_v9 = vld [vmem:[%s1259_s1 + $0x104] ss:$8 sps:$4 sm:$0xff] (!%p116_p9)   ;;  %v869_v10 = vld [vmem:[%s1259_s1 + $0x100] ss:$8 sps:$4 sm:$0xff] (!%p116_p9)  }
  0x11   : > { %v855_v11 = vld [vmem:[%s1259_s1 + $0x44] ss:$8 sps:$4 sm:$0xff] (!%p116_p9)   ;;  %485 = vmatprep.subr.bf16.mxu1 (!%p116_p9), %v867_v9  ;;  %v873_v12 = vld [vmem:[%s1259_s1 + $0x114] ss:$8 sps:$4 sm:$0xff] (!%p116_p9)   ;;  %v875_v13 = vld [vmem:[%s1259_s1 + $0x110] ss:$8 sps:$4 sm:$0xff] (!%p116_p9)  }
  0x12   : > { %486 = vmatpush1.bf16.msra.mxu1 (!%p116_p9), %v869_v10  ;;  %v857_v14 = vld [vmem:[%s1259_s1 + $0x40] ss:$8 sps:$4 sm:$0xff] (!%p116_p9)   ;;  %v858_v15 = vld [vmem:[%s1259_s1 + $0x54] ss:$8 sps:$4 sm:$0xff] (!%p116_p9)   ;;  %v879_v16 = vld [vmem:[%s1259_s1 + $0x124] ss:$8 sps:$4 sm:$0xff] (!%p116_p9)  }
  0x13   : > { %447 = vmatpush1.bf16.msra.mxu0 (!%p116_p9), %v848_v4  ;;  %487 = vmatprep.subr.bf16.mxu1 (!%p116_p9), %v873_v12  ;;  %v881_v17 = vld [vmem:[%s1259_s1 + $0x120] ss:$8 sps:$4 sm:$0xff] (!%p116_p9)   ;;  %v860_v18 = vld [vmem:[%s1259_s1 + $0x50] ss:$8 sps:$4 sm:$0xff] (!%p116_p9)   ;;  %v885_v19 = vld [vmem:[%s1259_s1 + $0x134] ss:$8 sps:$4 sm:$0xff] (!%p116_p9)  }
  0x14   : > { %448 = vmatprep.subr.bf16.mxu0 (!%p116_p9), %v849_v5  ;;  %v861_v20 = vld [vmem:[%s1259_s1 + $0x64] ss:$8 sps:$4 sm:$0xff] (!%p116_p9)   ;;  %v887_v21 = vld [vmem:[%s1259_s1 + $0x130] ss:$8 sps:$4 sm:$0xff] (!%p116_p9)   ;;  %v863_v22 = vld [vmem:[%s1259_s1 + $0x60] ss:$8 sps:$4 sm:$0xff] (!%p116_p9)   ;;  %v578_v5 = vlaneseq (!%p116_p9) }
  0x15   : > { %s138_s23 = scalar_select %p137_p10, %s1027_s13, 1  ;;  %v891_v23 = vld [vmem:[%s1259_s1 + $0x144] ss:$8 sps:$4 sm:$0xff]   ;;  %v864_v24 = vld [vmem:[%s1259_s1 + $0x74] ss:$8 sps:$4 sm:$0xff]   ;;  %vm988_vm0 = vmmov 0  }
  0x16   : > { %488 = vmatpush1.bf16.msra.mxu1 %v875_v13  ;;  %v893_v25 = vld [vmem:[%s1259_s1 + $0x140] ss:$8 sps:$4 sm:$0xff]   ;;  %v866_v26 = vld [vmem:[%s1259_s1 + $0x70] ss:$8 sps:$4 sm:$0xff]   ;;  %v897_v27 = vld [vmem:[%s1259_s1 + $0x154] ss:$8 sps:$4 sm:$0xff]  }
  0x17   : > { %449 = vmatpush1.bf16.msra.mxu0 %v851_v6  ;;  %489 = vmatprep.subr.bf16.mxu1 %v879_v16  ;;  %s799_s4 = smul.u32 12, %s138_s23  ;;  %v870_v28 = vld [vmem:[%s1259_s1 + $0x84] ss:$8 sps:$4 sm:$0xff]   ;;  %v899_v29 = vld [vmem:[%s1259_s1 + $0x150] ss:$8 sps:$4 sm:$0xff]   ;;  %s989_s28 = smov 64  }
  0x18   : > { %450 = vmatprep.subr.bf16.mxu0 %v852_v7  ;;  %v872_v30 = vld [vmem:[%s1259_s1 + $0x80] ss:$8 sps:$4 sm:$0xff]   ;;  %v903_v31 = vld [vmem:[%s1259_s1 + $0x164] ss:$8 sps:$4 sm:$0xff]   ;;  %v876_v32 = vld [vmem:[%s1259_s1 + $0x94] ss:$8 sps:$4 sm:$0xff]  }
  0x19   : > { %s141_s24 = scalar_lea.vmem %s1258_s0, %s799_s4  ;;  %v905_v35 = vld [vmem:[%s1259_s1 + $0x160] ss:$8 sps:$4 sm:$0xff]   ;;  %v878_v36 = vld [vmem:[%s1259_s1 + $0x90] ss:$8 sps:$4 sm:$0xff]   ;;  %v909_v37 = vld [vmem:[%s1259_s1 + $0x174] ss:$8 sps:$4 sm:$0xff]  }
  0x1a   : > { %490 = vmatpush1.bf16.msra.mxu1 %v881_v17  ;;  %v143_v33 = vld [vmem:[%s141_s24] sm:$0xff]  ;;  %v911_v39 = vld [vmem:[%s1259_s1 + $0x170] ss:$8 sps:$4 sm:$0xff]   ;;  %v888_v41 = vld [vmem:[%s1259_s1 + $0xb4] ss:$8 sps:$4 sm:$0xff]   ;;  %vm531_vm1 = vcmask 523264  }
  0x1b   : > { %451 = vmatpush1.bf16.msra.mxu0 %v854_v8  ;;  %491 = vmatprep.subr.bf16.mxu1 %v885_v19  ;;  %v725_v34 = vcombine.high %v143_v33, %v143_v33  ;;  %v882_v38 = vld [vmem:[%s1259_s1 + $0xa4] ss:$8 sps:$4 sm:$0xff]   ;;  %v884_v40 = vld [vmem:[%s1259_s1 + $0xa0] ss:$8 sps:$4 sm:$0xff]   ;;  %v890_v43 = vld [vmem:[%s1259_s1 + $0xb0] ss:$8 sps:$4 sm:$0xff]   ;;  %v724_v52 = vcombine.low %v143_v33, %v143_v33 }
  0x1c   : > { %452 = vmatprep.subr.bf16.mxu0 %v855_v11  ;;  %v915_v42 = vld [vmem:[%s141_s24 + $0x8] ss:$0 sps:$4 sm:$0xff]   ;;  %v894_v44 = vld [vmem:[%s1259_s1 + $0xc4] ss:$8 sps:$4 sm:$0xff]   ;;  %v900_v46 = vld [vmem:[%s1259_s1 + $0xd4] ss:$8 sps:$4 sm:$0xff]  }
  0x1d   : > { %476 = vmatprep.mubr.bf16.mxu0 %v725_v34  ;;  %v896_v45 = vld [vmem:[%s1259_s1 + $0xc0] ss:$8 sps:$4 sm:$0xff]   ;;  %v902_v47 = vld [vmem:[%s1259_s1 + $0xd0] ss:$8 sps:$4 sm:$0xff]   ;;  %v906_v48 = vld [vmem:[%s1259_s1 + $0xe4] ss:$8 sps:$4 sm:$0xff]  }
  0x1e   : > { %492 = vmatpush1.bf16.msra.mxu1 %v887_v21  ;;  %v908_v49 = vld [vmem:[%s1259_s1 + $0xe0] ss:$8 sps:$4 sm:$0xff]   ;;  %v912_v50 = vld [vmem:[%s1259_s1 + $0xf4] ss:$8 sps:$4 sm:$0xff]   ;;  %v914_v51 = vld [vmem:[%s1259_s1 + $0xf0] ss:$8 sps:$4 sm:$0xff]  }
  0x1f   : > { %453 = vmatpush1.bf16.msra.mxu0 %v857_v14  ;;  %493 = vmatprep.subr.bf16.mxu1 %v891_v23  ;;  %vm600_vm2 = vcmask 1043456   ;;  %v579_v6 = vshrl.u32 %v578_v5, 7  ;;  %v581_v7 = vand.u32 127, %v578_v5  ;;  %vm584_vm4 = vcmask 64512   ;;  %s134_s29 = sand.u32 1, %s976_s10   ;;  %s778_s3 = sshll.u32 %s1027_s13, 7 }
  0x20   : > { %454 = vmatprep.subr.bf16.mxu0 %v858_v15  ;;  %s722_s30 = sshll.u32 %s134_s29, 3  ;;  %s1215_s24 = scalar_lea.hbm %s1260_s2, %s778_s3 }
  0x21   : > { %vm582_vm3 = vcmp.le.s32.totalorder %v581_v7, %v579_v6  ;;  %s136_s5 = scalar_lea.vmem [#allocation2], %s722_s30  ;;  %s646_s8 = scalar_lea.sflag [#allocation3], %s134_s29 }
  0x22   : > { %494 = vmatpush1.bf16.msra.mxu1 %v893_v25  ;;  %s659_s4 = sshll.u32 %s136_s5, 4  ;;  %s990_s13 = smov [#allocation2]   ;;  %s1217_s4 = int_to_ptr.vmem [resolvable:$true] %s659_s4 }
  0x23   : > { %455 = vmatpush1.bf16.msra.mxu0 %v860_v18  ;;  %495 = vmatprep.subr.bf16.mxu1 %v897_v27  ;;  %s922_s14 = scalar_lea.vmem %s1217_s4, 128  ;;  %s926_s16 = sshll.u32 %s990_s13, 4  ;;  %s927_s16 = int_to_ptr.vmem [resolvable:$false] %s926_s16 }
  0x24   : > { %456 = vmatprep.subr.bf16.mxu0 %v861_v20  ;;  %p923_p11 = scmp.ne.s32.totalorder %s1217_s4, %s922_s14  ;;  %s928_s17 = scalar_lea.vmem %s927_s16, 256 }
  0x25   : > { %p929_p0 = scmp.lt.s32.totalorder %s1217_s4, %s927_s16  ;;  %p930_p1 = scmp.lt.s32.totalorder %s928_s17, %s922_s14 }
  0x26   : > { %496 = vmatpush1.bf16.msra.mxu1 %v899_v29  ;;  %p924_p12 = pnand %p923_p11, %p1044_p5 }
  0x27   : > { %457 = vmatpush1.bf16.msra.mxu0 %v863_v22  ;;  %497 = vmatprep.subr.bf16.mxu1 %v903_v31  ;;  %p931_p2 = por %p930_p1, %p929_p0 }
  0x28   : > { %458 = vmatprep.subr.bf16.mxu0 %v864_v24  ;;  %p925_p13 = pneg %p924_p12 }
  0x2a   : > { %498 = vmatpush1.bf16.msra.mxu1 %v905_v35  ;;  %p932_p3 = pnand %p931_p2, %p925_p13 }
  0x2b   : > { %459 = vmatpush1.bf16.msra.mxu0 %v866_v26  ;;  %499 = vmatprep.subr.bf16.mxu1 %v909_v37 }
  0x2c   : > { %460 = vmatprep.subr.bf16.mxu0 %v870_v28 }
  0x2e   : > { %500 = vmatpush1.bf16.msra.mxu1 %v911_v39 }
  0x2f   : > { %461 = vmatpush1.bf16.msra.mxu0 %v872_v30  ;;  %785 = vmatprep.subr.bf16.mxu1 %v987_v57 }
  0x30   : > { %462 = vmatprep.subr.bf16.mxu0 %v876_v32 }
  0x31   : > { %518 = vmatmul.mubr.bf16.vlgmr.msra.gmra.mrb[0].mxu1 %v915_v42 }
  0x32   : > { %787 = vmatprep.mubr.msk.bf16.mxu1 %vm988_vm0, %v987_v57 }
  0x33   : > { %463 = vmatpush1.bf16.msra.mxu0 %v878_v36 }
  0x34   : > { %464 = vmatprep.subr.bf16.mxu0 %v882_v38 }
  0x37   : > { %465 = vmatpush1.bf16.msra.mxu0 %v884_v40 }
  0x38   : > { %466 = vmatprep.subr.bf16.mxu0 %v888_v41 }
  0x3b   : > { %467 = vmatpush1.bf16.msra.mxu0 %v890_v43 }
  0x3c   : > { %468 = vmatprep.subr.bf16.mxu0 %v894_v44 }
  0x3f   : > { %469 = vmatpush1.bf16.msra.mxu0 %v896_v45 }
  0x40   : > { %470 = vmatprep.subr.bf16.mxu0 %v900_v46 }
  0x43   : > { %471 = vmatpush1.bf16.msra.mxu0 %v902_v47 }
  0x44   : > { %472 = vmatprep.subr.bf16.mxu0 %v906_v48 }
  0x47   : > { %473 = vmatpush1.bf16.msra.mxu0 %v908_v49 }
  0x48   : > { %474 = vmatprep.subr.bf16.mxu0 %v912_v50 }
  0x4b   : > { %475 = vmatpush1.bf16.msra.mxu0 %v914_v51 }
  0x4e   : > { %477 = vmatmul.mubr.bf16.vlgmr.msra.gmra.mrb[0].mxu0 %v724_v52 }
 0x104   : > { %v519_v53 = vpop.f32.mrb[0].mxu1 }
 0x105   : > { %v521_v54 = vpop.f32.mrb[1].mxu1 }
 0x106   : > { %v523_v55 = vpop.f32.mrb[2].mxu1 }
 0x107   : > { %v524_v56 = vpop.f32.mrb[3].mxu1 }
 0x121   : > { %v478_v58 = vpop.f32.mrb[0].mxu0 }
 0x122   : > { %v520_v59 = vadd.f32 %v519_v53, %v478_v58  ;;  %v480_v60 = vpop.f32.mrb[1].mxu0 }
 0x123   : > { %v522_v61 = vadd.f32 %v521_v54, %v480_v60  ;;  %v482_v62 = vpop.f32.mrb[2].mxu0 }
 0x124   : > { %v526_v63 = vpack.c.bf16 %v520_v59, %v520_v59  ;;  %v483_v0 = vpop.f32.mrb[3].mxu0 }
 0x125   : > { %v527_v3 = vpack.c.bf16 %v522_v61, %v522_v61 }
 0x126   : > { %529 = vrot.lane.b32.xlu0 %v526_v63, %s989_s28 }
 0x127   : > { %v602_v4 = vsel %vm600_vm2, %v527_v3, 0 }
 0x198   : > { %v530_v1 = vpop.permute.xlu0 %529 }
 0x199   : > { %v536_v2 = vsel %vm531_vm1, %v530_v1, 0 }
 0x19a   : > { %786 = vmatpush3.bf16.xpose.msra.mxu1 %v536_v2 }
 0x19b   : > { %791 = vmatprep.subr.bf16.mxu1 %v987_v57 }
 0x1a1   : > { %788 = vmatmul.mubr.msk.bf16.vlgmr.msra.gmra.mrb[4].mxu1 %vm531_vm1, %v526_v63 }
 0x1a2   : > { %792 = vmatpush3.bf16.msra.mxu1 %v602_v4  ;;  %793 = vmatprep.mubr.msk.bf16.mxu1 %vm988_vm0, %v987_v57 }
 0x274   : > { %v572_v8 = vpop.f32.mrb[4].mxu1 }
 0x275   : > { %v583_v9 = vsel %vm582_vm3, %v572_v8, -1e+30  ;;  %v789_v10 = vpop.f32.mrb[5].mxu1 }
 0x276   : > { %v575_v11 = vpop.f32.mrb[6].mxu1  ;;  %v585_v12 = vsel %vm584_vm4, %v583_v9, -inf }
 0x277   : > { %586 = vmax.xlane.f32.xlu0 %v585_v12  ;;  %v790_v13 = vpop.f32.mrb[7].mxu1 }
 0x304   : > { %v587_v14 = vpop.xlane.xlu0 %586 }
 0x305   : > { %v588_v15 = vsub.f32 %v583_v9, %v587_v14 }
 0x307   : > { %v589_v16 = vmul.f32 1.442695, %v588_v15 }
 0x309   : > { %918 = vpow2.f32 %v589_v16 }
 0x313   : > { %v919_v17 = vpop.eup %918 }
 0x314   : > { %v591_v18 = vsel %vm584_vm4, %v919_v17, 0.0 }
 0x315   : > { %592 = vadd.xlane.f32.xlu1 %v591_v18 }
 0x3a2   : > { %v593_v19 = vpop.xlane.xlu1 %592 }
 0x3a3   : > { %920 = vrcp.f32 %v593_v19 }
 0x3ad   : > { %v921_v20 = vpop.eup %920 }
 0x3ae   : > { %v595_v21 = vmul.f32 %v921_v20, %v919_v17 }
 0x3b0   : > { %v596_v22 = vpack.c.bf16 %v595_v21, %v595_v21 }
 0x3b2   : > { %794 = vmatmul.mubr.msk.bf16.vlgmr.msra.gmra.mrb[8].mxu1 %vm584_vm4, %v596_v22 }
 0x485   : > { %v638_v23 = vpop.f32.mrb[8].mxu1 }
 0x486   : > { %644 = vst.msk [vmem:[%s136_s5] sm:$0xff] %vm531_vm1, %v638_v23  ;;  %v795_v24 = vpop.f32.mrb[9].mxu1 }
 0x487   : > { %v641_v25 = vpop.f32.mrb[10].mxu1 }
 0x488   : > { %935 = shalt.err (!%p932_p3)
}
 0x489   : > { %s936_s21 = scalar_lea.hbm %s1215_s24, 128  ;;  %s940_s25 = scalar_lea.hbm %s1260_s2, 256 }
 0x48a   : > { %p937_p4 = scmp.ne.s32.totalorder %s1215_s24, %s936_s21  ;;  %p941_p9 = scmp.lt.u32.totalorder %s1215_s24, %s1260_s2 }
 0x48b   : > { %p942_p10 = scmp.lt.u32.totalorder %s940_s25, %s936_s21  ;;  %p944_p12 = scmp.lt.u32.totalorder %s936_s21, %s1215_s24 }
 0x48c   : > { %p938_p7 = pnand %p937_p4, %p1044_p5 }
 0x48d   : > { %p943_p11 = por %p942_p10, %p941_p9 }
 0x48e   : > { %p939_p8 = pneg %p938_p7 }
 0x48f   : > { %p945_p13 = por %p944_p12, %p943_p11 }
 0x491   : > { %p946_p0 = pnand %p945_p13, %p939_p8 }
 0x493   : > { %949 = shalt.err (!%p946_p0)
}
 0x494   : > { %800 = dma.vmem_to_hbm [thread:$0]  (%p1044_p5), %s1217_s4, 128, %s1215_s24, %s646_s8   ;;  %v796_v26 = vpop.f32.mrb[11].mxu1 }
 0x495 PF: > { %p806_p1 = scmp.ge.s32.totalorder %s984_s12, 2  ;;  %s671_s28 = sand.u32 1, %s972_s9  }
 0x496   : > { %s672_s29 = scalar_lea.sflag [#allocation3], %s671_s28 }
 0x497   : > { %p803_p2 = pnand %p806_p1, %p1048_p6 }
 0x499   : > { %967 = dma.done.wait (!%p803_p2), %s672_s29, 128  }
 0x49a   : > { %969 = vsyncadd (!%p803_p2), %s672_s29, 4294967168  ;;  %p12_p3 = scmp.ge.s32.totalorder %s1031_s15, 4   ;;  %s1263_s9 = smov %s976_s10 }
 0x49b   : > { %s1264_s10 = smov %s980_s11  ;;  %s1265_s11 = smov %s1042_s18 }
 0x49c   : > { %s1266_s12 = smov %s1031_s15  ;;  %14 = sbr.rel (!%p12_p3) target bundleno = 3 (0x3), region = 63 }
 0x4a3   :  { %677 = vsyncpa [#allocation3], 1 }
 0x4a4   :  { %679 = vsyncpa [#allocation3 + $0x1], 1 }

</bundles_post_ra>
